<compile_context>
chip_gen: v7x
topology: tpu7x:2x2x1
jax: 0.10.0
libtpu: 0.0.40
codegen_flags: <defaults>
</compile_context>

<pallas_src>
import functools

import jax
import jax.numpy as jnp
from jax.experimental import pallas as pl
from jax.experimental.pallas import tpu as pltpu


LANE = 128          # TPU lane width: hidden dims are padded to this (once, at init)
MAX_TILE_B = 1024   # upper bound on the batch tile (VMEM footprint stays ~1-2 MiB)


def _round_up(n, m):
    return ((n + m - 1) // m) * m


def _pad2d(a, rows, cols):
    """Zero-pad a 2-D array up to (rows, cols)."""
    r, c = a.shape
    return jnp.pad(a, ((0, rows - r), (0, cols - c)))


def _choose_tile_b(batch):
    """Batch tile: 128 floor; grow (cap 1024) for big batches but keep >=2 grid steps when the
    batch allows, so the "parallel" axis spans both v7x TensorCores."""
    n128 = _round_up(max(batch, 1), 128) // 128
    if n128 <= 1:
        return 128
    return min(MAX_TILE_B, 128 * ((n128 + 1) // 2))


def fcn_kernel(x_ref, w1_ref, b1_ref, w2_ref, b2_ref, w3_ref, b3_ref, out_ref):
    in_dim = x_ref.shape[1]      # true input width (e.g. 4) — static from the ref shape
    out_dim = out_ref.shape[1]   # true output width (e.g. 2) — static from the ref shape

    x = x_ref[...]               # (tile_b, in_dim) f32, no lane padding anywhere
    w1 = w1_ref[...]             # (in_dim, H0_PAD)

    # Layer 1 as `in_dim` rank-1 VPU updates: a K=4 MXU matmul would waste the systolic array
    # and force widening x to 128 lanes; a handful of broadcast multiply-adds on a
    # (tile_b, 128) tile are essentially free.
    h = b1_ref[...]              # (1, H0_PAD); broadcasts over the batch tile on the first add
    for k in range(in_dim):      # static unroll (in_dim is tiny)
        h = h + x[:, k:k + 1] * w1[k:k + 1, :]
    h = jnp.maximum(h, 0.0)      # nn.ReLU()

    # Hidden layer 2 and output layer: clean 128x128 MXU tiles, f32 accumulation.
    h = jnp.dot(h, w2_ref[...], preferred_element_type=jnp.float32) + b2_ref[...]
    h = jnp.maximum(h, 0.0)
    y = jnp.dot(h, w3_ref[...], preferred_element_type=jnp.float32) + b3_ref[...]

    # Store only the real output lanes -> narrow HBM writeback.  (Padded lanes of y are exactly
    # zero anyway since the W3/b3 padding is zero.)
    out_ref[...] = y[:, :out_dim].astype(out_ref.dtype)


@functools.partial(jax.jit, static_argnames=("dims", "tile_b"))
def _fcn_forward_impl(x, p, dims, tile_b):
    in_dim, h0, h1, out_dim = dims
    B = x.shape[0]
    b_p = _round_up(B, tile_b)
    n_tiles = b_p // tile_b

    # Only the batch axis is padded (so the grid covers it); the feature axis keeps its true
    # width — padded rows produce bias-only garbage that is sliced away below.
    x_p = jnp.pad(x, ((0, b_p - B), (0, 0))) if b_p != B else x

    w1, b1 = p["w1"], p["b1"]
    w2, b2 = p["w2"], p["b2"]
    w3, b3 = p["w3"], p["b3"]
    h0_p, h1_p, out_p = w1.shape[1], w2.shape[1], w3.shape[1]

    # Advisory cost hint computed from REAL (unpadded) dims.
    flops = 2 * B * (in_dim * h0 + h0 * h1 + h1 * out_dim)
    bytes_accessed = 4 * (B * in_dim + B * out_dim
                          + in_dim * h0 + h0 + h0 * h1 + h1 + h1 * out_dim + out_dim)

    out = pl.pallas_call(
        fcn_kernel,
        out_shape=jax.ShapeDtypeStruct((b_p, out_dim), jnp.float32),
        grid_spec=pltpu.PrefetchScalarGridSpec(
            num_scalar_prefetch=0,
            grid=(n_tiles,),
            in_specs=[
                # x: walks the batch axis at its true feature width (last block dim == array dim)
                pl.BlockSpec((tile_b, in_dim), lambda i: (i, 0)),
                # weights / biases: constant block index -> VMEM-resident across batch tiles
                pl.BlockSpec((in_dim, h0_p), lambda i: (0, 0)),
                pl.BlockSpec((1, h0_p), lambda i: (0, 0)),
                pl.BlockSpec((h0_p, h1_p), lambda i: (0, 0)),
                pl.BlockSpec((1, h1_p), lambda i: (0, 0)),
                pl.BlockSpec((h1_p, out_p), lambda i: (0, 0)),
                pl.BlockSpec((1, out_p), lambda i: (0, 0)),
            ],
            # output at its true width: minimal HBM writeback
            out_specs=pl.BlockSpec((tile_b, out_dim), lambda i: (i, 0)),
        ),
        compiler_params=pltpu.CompilerParams(
            # batch tiles are independent -> shard across v7x's 2 TCs (no-op on v5e/v6e)
            dimension_semantics=("parallel",),
        ),
        cost_estimate=pl.CostEstimate(
            flops=flops, transcendentals=0, bytes_accessed=bytes_accessed),
    )(x_p, w1, b1, w2, b2, w3, b3)

    return out[:B]


def fcn_forward(x, padded_params, dims):
    """x: (B, input_dim) f32 at its TRUE width.  padded_params: output of pad_params().
    dims: (input_dim, h0, h1, output_dim) true dims (python ints)."""
    tile_b = _choose_tile_b(x.shape[0])
    return _fcn_forward_impl(x, padded_params, tuple(int(d) for d in dims), tile_b)


def pad_params(params):
    """One-time (out-of-the-per-call-path) padding of hidden/output feature dims to 128 lanes.
    w1 keeps its true input dim because x is read unpadded.  Returns (padded_params, dims)."""
    w1, b1 = params["w1"], params["b1"]
    w2, b2 = params["w2"], params["b2"]
    w3, b3 = params["w3"], params["b3"]
    in_dim = w1.shape[0]
    h0, h1, out_dim = w1.shape[1], w2.shape[1], w3.shape[1]
    h0_p, h1_p, out_p = (_round_up(d, LANE) for d in (h0, h1, out_dim))
    padded = {
        "w1": _pad2d(w1, in_dim, h0_p), "b1": _pad2d(b1, 1, h0_p),
        "w2": _pad2d(w2, h0_p, h1_p),   "b2": _pad2d(b2, 1, h1_p),
        "w3": _pad2d(w3, h1_p, out_p),  "b3": _pad2d(b3, 1, out_p),
    }
    return padded, (in_dim, h0, h1, out_dim)


def init_params(key, input_dim, hidden_units, output_dim):
    """Deterministic init mimicking PyTorch nn.Linear default (U[-1/sqrt(fan_in), 1/sqrt(fan_in)])."""
    dims = [input_dim] + list(hidden_units) + [output_dim]
    params = {}
    keys = jax.random.split(key, 2 * (len(dims) - 1))
    for i in range(len(dims) - 1):
        fan_in, fan_out = dims[i], dims[i + 1]
        bound = 1.0 / jnp.sqrt(jnp.float32(fan_in))
        w = jax.random.uniform(keys[2 * i], (fan_in, fan_out),
                               minval=-bound, maxval=bound, dtype=jnp.float32)
        b = jax.random.uniform(keys[2 * i + 1], (1, fan_out),
                               minval=-bound, maxval=bound, dtype=jnp.float32)
        params[f"w{i + 1}"] = w
        params[f"b{i + 1}"] = b
    return params


def fcn_reference(x, params):
    """Pure-JAX reference for correctness checking."""
    h = jnp.maximum(x @ params["w1"] + params["b1"], 0.0)
    h = jnp.maximum(h @ params["w2"] + params["b2"], 0.0)
    return h @ params["w3"] + params["b3"]


if __name__ == "__main__":
    # Cart-pole-ish sizes: 4-dim state, two hidden layers of 32, 2 actions.
    INPUT_DIM = 4
    HIDDEN_UNITS = [32, 32]
    OUTPUT_DIM = 2
    BATCH = 256   # two 128-row batch tiles -> exercises the batch grid & parallel semantics

    key = jax.random.PRNGKey(0)
    kx, kp = jax.random.split(key)
    x = jax.random.normal(kx, (BATCH, INPUT_DIM), dtype=jnp.float32)
    params = init_params(kp, INPUT_DIM, HIDDEN_UNITS, OUTPUT_DIM)
    padded_params, dims = pad_params(params)   # done once, outside the per-call path

    out = jax.block_until_ready(fcn_forward(x, padded_params, dims))
    ref = fcn_reference(x, params)
    assert out.shape == (BATCH, OUTPUT_DIM)
    assert jnp.allclose(out, ref, atol=1e-5, rtol=1e-5), "Pallas output mismatch vs reference"

    # Also check a non-tile-multiple, tiny batch goes through the batch-padding path correctly.
    x_small = x[:8]
    out_small = jax.block_until_ready(fcn_forward(x_small, padded_params, dims))
    assert out_small.shape == (8, OUTPUT_DIM)
    assert jnp.allclose(out_small, ref[:8], atol=1e-5, rtol=1e-5), "Padded-batch path mismatch"

    print("KERNEL_OK")
</pallas_src>

<mosaic_0001>
module attributes {stable_mosaic.version = 11 : i64} {
  func.func @fcn_kernel(%arg0: i32, %arg1: memref<128x4xf32, #tpu.memory_space<vmem>>, %arg2: memref<4x128xf32, #tpu.memory_space<vmem>>, %arg3: memref<1x128xf32, #tpu.memory_space<vmem>>, %arg4: memref<128x128xf32, #tpu.memory_space<vmem>>, %arg5: memref<1x128xf32, #tpu.memory_space<vmem>>, %arg6: memref<128x128xf32, #tpu.memory_space<vmem>>, %arg7: memref<1x128xf32, #tpu.memory_space<vmem>>, %arg8: memref<128x2xf32, #tpu.memory_space<vmem>>) attributes {dimension_semantics = [#tpu.dimension_semantics<parallel>], iteration_bounds = array<i64: 2>, scalar_prefetch = 0 : i64, scratch_operands = 0 : i64, tpu.core_type = #tpu.core_type<tc>, window_params = [{transform_indices = @transform_0, window_bounds = array<i64: 128, 4>}, {pipeline_mode = #tpu.pipeline_mode<synchronous>, transform_indices = @transform_1, window_bounds = array<i64: 4, 128>}, {pipeline_mode = #tpu.pipeline_mode<synchronous>, transform_indices = @transform_2, window_bounds = array<i64: 1, 128>}, {pipeline_mode = #tpu.pipeline_mode<synchronous>, transform_indices = @transform_3, window_bounds = array<i64: 128, 128>}, {pipeline_mode = #tpu.pipeline_mode<synchronous>, transform_indices = @transform_4, window_bounds = array<i64: 1, 128>}, {pipeline_mode = #tpu.pipeline_mode<synchronous>, transform_indices = @transform_5, window_bounds = array<i64: 128, 128>}, {pipeline_mode = #tpu.pipeline_mode<synchronous>, transform_indices = @transform_6, window_bounds = array<i64: 1, 128>}, {transform_indices = @transform_7, window_bounds = array<i64: 128, 2>}]} {
    %c0 = arith.constant 0 : index
    %c0_0 = arith.constant 0 : index
    %0 = vector.load %arg1[%c0, %c0_0] : memref<128x4xf32, #tpu.memory_space<vmem>>, vector<128x4xf32>
    %c0_1 = arith.constant 0 : index
    %c0_2 = arith.constant 0 : index
    %1 = vector.load %arg2[%c0_1, %c0_2] : memref<4x128xf32, #tpu.memory_space<vmem>>, vector<4x128xf32>
    %c0_3 = arith.constant 0 : index
    %c0_4 = arith.constant 0 : index
    %2 = vector.load %arg3[%c0_3, %c0_4] : memref<1x128xf32, #tpu.memory_space<vmem>>, vector<1x128xf32>
    %3 = vector.extract_strided_slice %0 {offsets = [0, 0], sizes = [128, 1], strides = [1, 1]} : vector<128x4xf32> to vector<128x1xf32>
    %4 = vector.extract_strided_slice %1 {offsets = [0, 0], sizes = [1, 128], strides = [1, 1]} : vector<4x128xf32> to vector<1x128xf32>
    %5 = vector.broadcast %3 : vector<128x1xf32> to vector<128x128xf32>
    %6 = vector.broadcast %4 : vector<1x128xf32> to vector<128x128xf32>
    %7 = arith.mulf %5, %6 : vector<128x128xf32>
    %8 = vector.broadcast %2 : vector<1x128xf32> to vector<128x128xf32>
    %9 = arith.addf %8, %7 : vector<128x128xf32>
    %10 = vector.extract_strided_slice %0 {offsets = [0, 1], sizes = [128, 1], strides = [1, 1]} : vector<128x4xf32> to vector<128x1xf32>
    %11 = vector.extract_strided_slice %1 {offsets = [1, 0], sizes = [1, 128], strides = [1, 1]} : vector<4x128xf32> to vector<1x128xf32>
    %12 = vector.broadcast %10 : vector<128x1xf32> to vector<128x128xf32>
    %13 = vector.broadcast %11 : vector<1x128xf32> to vector<128x128xf32>
    %14 = arith.mulf %12, %13 : vector<128x128xf32>
    %15 = arith.addf %9, %14 : vector<128x128xf32>
    %16 = vector.extract_strided_slice %0 {offsets = [0, 2], sizes = [128, 1], strides = [1, 1]} : vector<128x4xf32> to vector<128x1xf32>
    %17 = vector.extract_strided_slice %1 {offsets = [2, 0], sizes = [1, 128], strides = [1, 1]} : vector<4x128xf32> to vector<1x128xf32>
    %18 = vector.broadcast %16 : vector<128x1xf32> to vector<128x128xf32>
    %19 = vector.broadcast %17 : vector<1x128xf32> to vector<128x128xf32>
    %20 = arith.mulf %18, %19 : vector<128x128xf32>
    %21 = arith.addf %15, %20 : vector<128x128xf32>
    %22 = vector.extract_strided_slice %0 {offsets = [0, 3], sizes = [128, 1], strides = [1, 1]} : vector<128x4xf32> to vector<128x1xf32>
    %23 = vector.extract_strided_slice %1 {offsets = [3, 0], sizes = [1, 128], strides = [1, 1]} : vector<4x128xf32> to vector<1x128xf32>
    %24 = vector.broadcast %22 : vector<128x1xf32> to vector<128x128xf32>
    %25 = vector.broadcast %23 : vector<1x128xf32> to vector<128x128xf32>
    %26 = arith.mulf %24, %25 : vector<128x128xf32>
    %27 = arith.addf %21, %26 : vector<128x128xf32>
    %cst = arith.constant 0.000000e+00 : f32
    %28 = vector.broadcast %cst : f32 to vector<128x128xf32>
    %29 = arith.maximumf %27, %28 : vector<128x128xf32>
    %c0_5 = arith.constant 0 : index
    %c0_6 = arith.constant 0 : index
    %30 = vector.load %arg4[%c0_5, %c0_6] : memref<128x128xf32, #tpu.memory_space<vmem>>, vector<128x128xf32>
    %cst_7 = arith.constant dense<0.000000e+00> : vector<128x128xf32>
    %31 = tpu.matmul %29, %30, %cst_7 {dimension_numbers = #tpu.dot_dimension_numbers<[1], [0], [0], [1], [0, 0, 1, 1], [], []>} : vector<128x128xf32>, vector<128x128xf32>, vector<128x128xf32> -> vector<128x128xf32>
    %c0_8 = arith.constant 0 : index
    %c0_9 = arith.constant 0 : index
    %32 = vector.load %arg5[%c0_8, %c0_9] : memref<1x128xf32, #tpu.memory_space<vmem>>, vector<1x128xf32>
    %33 = vector.broadcast %32 : vector<1x128xf32> to vector<128x128xf32>
    %34 = arith.addf %31, %33 : vector<128x128xf32>
    %cst_10 = arith.constant 0.000000e+00 : f32
    %35 = vector.broadcast %cst_10 : f32 to vector<128x128xf32>
    %36 = arith.maximumf %34, %35 : vector<128x128xf32>
    %c0_11 = arith.constant 0 : index
    %c0_12 = arith.constant 0 : index
    %37 = vector.load %arg6[%c0_11, %c0_12] : memref<128x128xf32, #tpu.memory_space<vmem>>, vector<128x128xf32>
    %cst_13 = arith.constant dense<0.000000e+00> : vector<128x128xf32>
    %38 = tpu.matmul %36, %37, %cst_13 {dimension_numbers = #tpu.dot_dimension_numbers<[1], [0], [0], [1], [0, 0, 1, 1], [], []>} : vector<128x128xf32>, vector<128x128xf32>, vector<128x128xf32> -> vector<128x128xf32>
    %c0_14 = arith.constant 0 : index
    %c0_15 = arith.constant 0 : index
    %39 = vector.load %arg7[%c0_14, %c0_15] : memref<1x128xf32, #tpu.memory_space<vmem>>, vector<1x128xf32>
    %40 = vector.broadcast %39 : vector<1x128xf32> to vector<128x128xf32>
    %41 = arith.addf %38, %40 : vector<128x128xf32>
    %42 = vector.extract_strided_slice %41 {offsets = [0, 0], sizes = [128, 2], strides = [1, 1]} : vector<128x128xf32> to vector<128x2xf32>
    %c0_16 = arith.constant 0 : index
    %c0_17 = arith.constant 0 : index
    %43 = vector.load %arg8[%c0_16, %c0_17] : memref<128x2xf32, #tpu.memory_space<vmem>>, vector<128x2xf32>
    tpu.vector_store %arg8[%c0_16, %c0_17], %42 {strides = array<i32>} : memref<128x2xf32, #tpu.memory_space<vmem>>, vector<128x2xf32>,
    return
  }
  func.func @transform_0(%arg0: i32) -> (i32, i32) {
    %c0_i32 = arith.constant 0 : i32
    %c0_i32_0 = arith.constant 0 : i32
    return %arg0, %c0_i32 : i32, i32
  }
  func.func @transform_1(%arg0: i32) -> (i32, i32) {
    %c0_i32 = arith.constant 0 : i32
    %c0_i32_0 = arith.constant 0 : i32
    %c0_i32_1 = arith.constant 0 : i32
    return %c0_i32, %c0_i32_0 : i32, i32
  }
  func.func @transform_2(%arg0: i32) -> (i32, i32) {
    %c0_i32 = arith.constant 0 : i32
    %c0_i32_0 = arith.constant 0 : i32
    %c0_i32_1 = arith.constant 0 : i32
    return %c0_i32, %c0_i32_0 : i32, i32
  }
  func.func @transform_3(%arg0: i32) -> (i32, i32) {
    %c0_i32 = arith.constant 0 : i32
    %c0_i32_0 = arith.constant 0 : i32
    %c0_i32_1 = arith.constant 0 : i32
    return %c0_i32, %c0_i32_0 : i32, i32
  }
  func.func @transform_4(%arg0: i32) -> (i32, i32) {
    %c0_i32 = arith.constant 0 : i32
    %c0_i32_0 = arith.constant 0 : i32
    %c0_i32_1 = arith.constant 0 : i32
    return %c0_i32, %c0_i32_0 : i32, i32
  }
  func.func @transform_5(%arg0: i32) -> (i32, i32) {
    %c0_i32 = arith.constant 0 : i32
    %c0_i32_0 = arith.constant 0 : i32
    %c0_i32_1 = arith.constant 0 : i32
    return %c0_i32, %c0_i32_0 : i32, i32
  }
  func.func @transform_6(%arg0: i32) -> (i32, i32) {
    %c0_i32 = arith.constant 0 : i32
    %c0_i32_0 = arith.constant 0 : i32
    %c0_i32_1 = arith.constant 0 : i32
    return %c0_i32, %c0_i32_0 : i32, i32
  }
  func.func @transform_7(%arg0: i32) -> (i32, i32) {
    %c0_i32 = arith.constant 0 : i32
    %c0_i32_0 = arith.constant 0 : i32
    return %arg0, %c0_i32 : i32, i32
  }
}

</mosaic_0001>

<bundles_post_ra>
// kernel: _fcn_forward_impl.1
= control target key start
LH: loop header
LB: loop body
LE: loop exit
PB: predicated region body
PF: predicated region fallthrough
CT: control target
= control target key end

     0   :  { %s1516_s24 = smov 0   ;;  %s1900_s0 = inlined_call_operand.vmem [shape: f32[256,4], index: 0, kind: input, shape index: {}]   ;;  %s1901_s1 = inlined_call_operand.vmem [shape: f32[4,128], index: 1, kind: input, shape index: {}]   ;;  %s1902_s2 = inlined_call_operand.vmem [shape: f32[1,128], index: 2, kind: input, shape index: {}]   ;;  %s1903_s3 = inlined_call_operand.vmem [shape: f32[128,128], index: 3, kind: input, shape index: {}]   ;;  %s1904_s4 = inlined_call_operand.vmem [shape: f32[1,128], index: 4, kind: input, shape index: {}]   ;;  %s1905_s5 = inlined_call_operand.vmem [shape: f32[128,128], index: 5, kind: input, shape index: {}]   ;;  %s1906_s6 = inlined_call_operand.vmem [shape: f32[1,128], index: 6, kind: input, shape index: {}]   ;;  %s1907_s7 = inlined_call_operand.vmem [shape: f32[256,2], index: 7, kind: output, shape index: {}]  }
   0x1 LB: > { %s1163_s25 = sadd.s32 4294967295, %s1470_s24   ;;  %p1167_p0 = scmp.ge.s32.totalorder %s1470_s24, 1  ;;  %s1470_s24 = sphi %s1516_s24, %s17_s24  }
   0x2   : > { %p238_p1 = scmp.lt.s32.totalorder %s1470_s24, 3 }
   0x4   : > { %p239_p2 = pnand %p1167_p0, %p238_p1 }
   0x5   : > { %s1168_s26 = sshll.u32 (!%p239_p2), %s1163_s25, 4  ;;  %v1472_v0 = vmov (!%p239_p2), 3   ;;  %v1473_v1 = vmov (!%p239_p2), 1   ;;  %v738_v2 = vld [vmem:[%s1903_s3] sm:$0xff] (!%p239_p2)  ;;  %v739_v3 = vld [vmem:[%s1903_s3 + $0x8] sm:$0xff] (!%p239_p2)  ;;  %v740_v8 = vld [vmem:[%s1903_s3 + $0x10] sm:$0xff] (!%p239_p2)  ;;  %v380_v45 = vlaneseq (!%p239_p2) }
   0x6   : > { %242 = sbr.rel (%p239_p2) target bundleno = 774 (0x306), region = 48  ;;  %1433 = vset.pattern.permute.xlu0 (!%p239_p2), %v1472_v0  ;;  %1429 = vset.pattern.permute.xlu1 (!%p239_p2), %v1473_v1  ;;  %p271_p3 = scmp.lt.s32.totalorder (!%p239_p2), %s1168_s26, 31  ;;  %v1353_v6 = vpack.c.bf16 (!%p239_p2), %v739_v3, %v738_v2  ;;  %v741_v9 = vld [vmem:[%s1903_s3 + $0x18] sm:$0xff] (!%p239_p2)  ;;  %v742_v12 = vld [vmem:[%s1903_s3 + $0x20] sm:$0xff] (!%p239_p2)  ;;  %v743_v13 = vld [vmem:[%s1903_s3 + $0x28] sm:$0xff] (!%p239_p2)  ;;  %v1474_v15 = vmov (!%p239_p2), 2  }
   0x7   : > { %v1357_v10 = vpack.c.bf16 (!%p239_p2), %v741_v9, %v740_v8  ;;  %v1361_v14 = vpack.c.bf16 (!%p239_p2), %v743_v13, %v742_v12  ;;  %v744_v17 = vld [vmem:[%s1903_s3 + $0x30] sm:$0xff] (!%p239_p2)  ;;  %v745_v18 = vld [vmem:[%s1903_s3 + $0x38] sm:$0xff] (!%p239_p2)  ;;  %v746_v20 = vld [vmem:[%s1903_s3 + $0x40] sm:$0xff] (!%p239_p2)  ;;  %v1475_v23 = vmov (!%p239_p2), 0   ;;  %v381_v48 = vshrl.u32 (!%p239_p2), %v380_v45, 7 }
   0x8   : > { %1354 = vmatprep.subr.bf16.mxu0 (!%p239_p2), %v1353_v6  ;;  %v1365_v19 = vpack.c.bf16 (!%p239_p2), %v745_v18, %v744_v17  ;;  %v747_v21 = vld [vmem:[%s1903_s3 + $0x48] sm:$0xff] (!%p239_p2)  ;;  %v748_v24 = vld [vmem:[%s1903_s3 + $0x50] sm:$0xff] (!%p239_p2)  ;;  %v749_v25 = vld [vmem:[%s1903_s3 + $0x58] sm:$0xff] (!%p239_p2)  ;;  %vm1090_vm0 = vcmask (!%p239_p2), 15360  }
   0x9   : > { %1356 = vmatpush3.bf16.msra.mxu0 (!%p239_p2), %v1353_v6  ;;  %v1369_v22 = vpack.c.bf16 (!%p239_p2), %v747_v21, %v746_v20  ;;  %v1373_v26 = vpack.c.bf16 (!%p239_p2), %v749_v25, %v748_v24  ;;  %v750_v28 = vld [vmem:[%s1903_s3 + $0x60] sm:$0xff] (!%p239_p2)  ;;  %v751_v29 = vld [vmem:[%s1903_s3 + $0x68] sm:$0xff] (!%p239_p2)  ;;  %v752_v32 = vld [vmem:[%s1903_s3 + $0x70] sm:$0xff] (!%p239_p2)  ;;  %v382_v51 = vsub.s32 (!%p239_p2), 0, %v381_v48  ;;  %v488_v52 = vsub.s32 (!%p239_p2), 1, %v381_v48 }
   0xa   : > { %1358 = vmatprep.subr.bf16.mxu0 (!%p239_p2), %v1357_v10  ;;  %v1377_v30 = vpack.c.bf16 (!%p239_p2), %v751_v29, %v750_v28  ;;  %v753_v33 = vld [vmem:[%s1903_s3 + $0x78] sm:$0xff] (!%p239_p2)  ;;  %v298_v54 = vld [vmem:[%s1901_s1] sm:$0xf] (!%p239_p2)  ;;  %v588_v56 = vsub.s32 (!%p239_p2), 2, %v381_v48  ;;  %v688_v59 = vsub.s32 (!%p239_p2), 3, %v381_v48 }
   0xb   : > { %v1381_v34 = vpack.c.bf16 (!%p239_p2), %v753_v33, %v752_v32  ;;  %v1670_v57 = vrot.slane (!%p239_p2), %v298_v54, %v382_v51  ;;  %v1673_v58 = vrot.slane (!%p239_p2), %v298_v54, %v488_v52  ;;  %v1678_v60 = vld [vmem:[%s1902_s2] ss:$0 sm:$0xff] (!%p239_p2) }
   0xc   : > { %v1680_v62 = vrot.slane (!%p239_p2), %v298_v54, %v588_v56 }
   0xd   : > { %s1909_s26 = smov (!%p271_p3, %s1168_s26), 31  ;;  %1360 = vmatpush3.bf16.msra.mxu0 %v1357_v10 }
   0xe   : > { %s1169_s27 = sshll.u32 %s1909_s26, 3  ;;  %1362 = vmatprep.subr.bf16.mxu0 %v1361_v14 }
   0xf   : > { %s1534_s30 = scalar_lea.vmem %s1900_s0, %s1169_s27  ;;  %s1863_s23 = scalar_lea.vmem %s1907_s7, %s1169_s27 }
  0x10   : > { %v283_v4 = vld [vmem:[%s1534_s30 + $0x8] sm:$0xff]  ;;  %v282_v5 = vld [vmem:[%s1534_s30] sm:$0xff]  ;;  %v1545_v7 = vld [vmem:[%s1534_s30 + $0x10] sm:$0xff] }
  0x11   : > { %627 = vperm.xlu0 %1433, %v283_v4   ;;  %423 = vperm.xlu1 %1429, %v282_v5   ;;  %v1555_v11 = vld [vmem:[%s1534_s30 + $0x38] sm:$0xff]  ;;  %v1566_v16 = vld [vmem:[%s1534_s30 + $0x40] sm:$0xff]  ;;  %v287_v35 = vld [vmem:[%s1534_s30 + $0x28] sm:$0xff] }
  0x12   : > { %1364 = vmatpush3.bf16.msra.mxu0 %v1361_v14  ;;  %v285_v27 = vld [vmem:[%s1534_s30 + $0x18] sm:$0xff]  ;;  %v286_v31 = vld [vmem:[%s1534_s30 + $0x20] sm:$0xff]  ;;  %v288_v36 = vld [vmem:[%s1534_s30 + $0x30] sm:$0xff] }
  0x13   : > { %1366 = vmatprep.subr.bf16.mxu0 %v1365_v19  ;;  %v1611_v37 = vld [vmem:[%s1534_s30 + $0x58] sm:$0xff]  ;;  %v1616_v38 = vld [vmem:[%s1534_s30 + $0x60] sm:$0xff]  ;;  %v1633_v39 = vld [vmem:[%s1534_s30 + $0x68] sm:$0xff] }
  0x14   : > { %v291_v40 = vld [vmem:[%s1534_s30 + $0x48] sm:$0xff]  ;;  %v1640_v41 = vld [vmem:[%s1534_s30 + $0x70] sm:$0xff] }
  0x15   : > { %631 = vperm.xlu0 %1433, %v1545_v7   ;;  %427 = vperm.xlu1 %1429, %v283_v4   ;;  %v292_v42 = vld [vmem:[%s1534_s30 + $0x50] sm:$0xff] }
  0x16   : > { %1368 = vmatpush3.bf16.msra.mxu0 %v1365_v19 }
  0x17   : > { %1370 = vmatprep.subr.bf16.mxu0 %v1369_v22 }
  0x19   : > { %651 = vperm.xlu0 %1433, %v1555_v11   ;;  %1430 = vset.pattern.permute.xlu1 %v1474_v15 }
  0x1a   : > { %523 = vperm.xlu1 %1430, %v282_v5   ;;  %1372 = vmatpush3.bf16.msra.mxu0 %v1369_v22 }
  0x1b   : > { %1374 = vmatprep.subr.bf16.mxu0 %v1373_v26 }
  0x1d   : > { %655 = vperm.xlu0 %1433, %v1566_v16  }
  0x1e   : > { %527 = vperm.xlu1 %1430, %v283_v4   ;;  %1376 = vmatpush3.bf16.msra.mxu0 %v1373_v26  ;;  %v297_v26 = vld [vmem:[%s1534_s30 + $0x78] sm:$0xff] }
  0x1f   : > { %1378 = vmatprep.subr.bf16.mxu0 %v1377_v30 }
  0x21   : > { %1449 = vset.pattern.permute.xlu0 %v1475_v23 }
  0x22   : > { %302 = vperm.xlu0 %1449, %v282_v5   ;;  %1431 = vset.pattern.permute.xlu1 %v1472_v0 }
  0x23   : > { %623 = vperm.xlu1 %1431, %v282_v5   ;;  %1380 = vmatpush3.bf16.msra.mxu0 %v1377_v30 }
  0x24   : > { %1382 = vmatprep.subr.bf16.mxu0 %v1381_v34 }
  0x26   : > { %307 = vperm.xlu0 %1449, %v283_v4   ;;  %v1685_v4 = vrot.slane %v298_v54, %v688_v59 }
  0x27   : > { %1432 = vset.pattern.permute.xlu1 %v1473_v1  ;;  %1384 = vmatpush3.bf16.msra.mxu0 %v1381_v34 }
  0x28   : > { %435 = vperm.xlu1 %1432, %v285_v27  }
  0x2a   : > { %312 = vperm.xlu0 %1449, %v1545_v7  }
  0x2c   : > { %1434 = vset.pattern.permute.xlu1 %v1475_v23 }
  0x2d   : > { %322 = vperm.xlu1 %1434, %v286_v31  }
  0x2e   : > { %317 = vperm.xlu0 %1449, %v285_v27  }
  0x31   : > { %1435 = vset.pattern.permute.xlu1 %v1474_v15 }
  0x32   : > { %327 = vperm.xlu0 %1449, %v287_v35   ;;  %531 = vperm.xlu1 %1435, %v1545_v7  }
  0x36   : > { %332 = vperm.xlu0 %1449, %v288_v36   ;;  %535 = vperm.xlu1 %1435, %v285_v27  }
  0x3a   : > { %357 = vperm.xlu0 %1449, %v1611_v37   ;;  %1436 = vset.pattern.permute.xlu1 %v1473_v1 }
  0x3b   : > { %439 = vperm.xlu1 %1436, %v286_v31  }
  0x3e   : > { %362 = vperm.xlu0 %1449, %v1616_v38  }
  0x3f   : > { %443 = vperm.xlu1 %1436, %v287_v35  }
  0x42   : > { %1451 = vset.pattern.permute.xlu0 %v1474_v15 }
  0x43   : > { %543 = vperm.xlu0 %1451, %v287_v35   ;;  %1437 = vset.pattern.permute.xlu1 %v1472_v0 }
  0x44   : > { %635 = vperm.xlu1 %1437, %v285_v27  }
  0x47   : > { %547 = vperm.xlu0 %1451, %v288_v36  }
  0x48   : > { %1438 = vset.pattern.permute.xlu1 %v1474_v15 }
  0x49   : > { %539 = vperm.xlu1 %1438, %v286_v31  }
  0x4b   : > { %567 = vperm.xlu0 %1451, %v1611_v37  }
  0x4d   : > { %1439 = vset.pattern.permute.xlu1 %v1475_v23 }
  0x4e   : > { %337 = vperm.xlu1 %1439, %v1555_v11  }
  0x4f   : > { %571 = vperm.xlu0 %1451, %v1616_v38  }
  0x52   : > { %1440 = vset.pattern.permute.xlu1 %v1473_v1 }
  0x53   : > { %1457 = vset.pattern.permute.xlu0 %v1473_v1  ;;  %447 = vperm.xlu1 %1440, %v288_v36  }
  0x54   : > { %431 = vperm.xlu0 %1457, %v1545_v7  }
  0x57   : > { %1441 = vset.pattern.permute.xlu1 %v1472_v0 }
  0x58   : > { %451 = vperm.xlu0 %1457, %v1555_v11   ;;  %639 = vperm.xlu1 %1441, %v286_v31  }
  0x5c   : > { %643 = vperm.xlu1 %1441, %v287_v35   ;;  %455 = vperm.xlu0 %1457, %v1566_v16  }
  0x60   : > { %1442 = vset.pattern.permute.xlu1 %v1475_v23  ;;  %475 = vperm.xlu0 %1457, %v1633_v39  }
  0x61   : > { %342 = vperm.xlu1 %1442, %v1566_v16  }
  0x64   : > { %479 = vperm.xlu0 %1457, %v1640_v41  }
  0x65   : > { %347 = vperm.xlu1 %1442, %v291_v40  }
  0x68   : > { %1461 = vset.pattern.permute.xlu0 %v1472_v0 }
  0x69   : > { %1443 = vset.pattern.permute.xlu1 %v1474_v15  ;;  %675 = vperm.xlu0 %1461, %v1633_v39  }
  0x6a   : > { %551 = vperm.xlu1 %1443, %v1555_v11  }
  0x6d   : > { %679 = vperm.xlu0 %1461, %v1640_v41  }
  0x6e   : > { %1444 = vset.pattern.permute.xlu1 %v1472_v0 }
  0x6f   : > { %647 = vperm.xlu1 %1444, %v288_v36  }
  0x73   : > { %1445 = vset.pattern.permute.xlu1 %v1473_v1 }
  0x74   : > { %459 = vperm.xlu1 %1445, %v291_v40  }
  0x78   : > { %1446 = vset.pattern.permute.xlu1 %v1475_v23 }
  0x79   : > { %352 = vperm.xlu1 %1446, %v292_v42  }
  0x7d   : > { %1447 = vset.pattern.permute.xlu1 %v1474_v15 }
  0x7e   : > { %555 = vperm.xlu1 %1447, %v1566_v16  }
  0x82   : > { %559 = vperm.xlu1 %1447, %v291_v40  }
  0x86   : > { %1448 = vset.pattern.permute.xlu1 %v1473_v1 }
  0x87   : > { %463 = vperm.xlu1 %1448, %v292_v42  }
  0x8b   : > { %467 = vperm.xlu1 %1448, %v1611_v37  }
  0x8f   : > { %1450 = vset.pattern.permute.xlu1 %v1472_v0 }
  0x90   : > { %659 = vperm.xlu1 %1450, %v291_v40   ;;  %v424_v43 = vpop.permute.xlu1 %423  ;;  %v628_v44 = vpop.permute.xlu0 %627 }
  0x91   : > { %v490_v3 = vmul.f32 %v1673_v58, %v424_v43  ;;  %v691_v17 = vmul.f32 %v1685_v4, %v628_v44 }
  0x94   : > { %1452 = vset.pattern.permute.xlu1 %v1474_v15  ;;  %v428_v46 = vpop.permute.xlu1 %427  ;;  %v1658_v47 = vpop.permute.xlu0 %631 }
  0x95   : > { %563 = vperm.xlu1 %1452, %v292_v42   ;;  %v491_v11 = vmul.f32 %v1673_v58, %v428_v46 }
  0x98   : > { %v1660_v49 = vpop.permute.xlu0 %651 }
  0x99   : > { %1453 = vset.pattern.permute.xlu1 %v1475_v23  ;;  %v524_v50 = vpop.permute.xlu1 %523 }
  0x9a   : > { %367 = vperm.xlu1 %1453, %v1633_v39   ;;  %v590_v7 = vmul.f32 %v1680_v62, %v524_v50 }
  0x9c   : > { %v1664_v53 = vpop.permute.xlu0 %655 }
  0x9d   : > { %v528_v55 = vpop.permute.xlu1 %527 }
  0x9e   : > { %1454 = vset.pattern.permute.xlu1 %v1473_v1  ;;  %v591_v18 = vmul.f32 %v1680_v62, %v528_v55 }
  0x9f   : > { %471 = vperm.xlu1 %1454, %v1616_v38  }
  0xa1   : > { %v303_v61 = vpop.permute.xlu0 %302 }
  0xa2   : > { %v384_v63 = vmul.f32 %v1670_v57, %v303_v61  ;;  %v624_v2 = vpop.permute.xlu1 %623 }
  0xa3   : > { %1455 = vset.pattern.permute.xlu1 %v1472_v0  ;;  %v690_v12 = vmul.f32 %v1685_v4, %v624_v2  ;;  %v924_v2 = vld [vmem:[%s1905_s5 + $0x10] sm:$0xff] }
  0xa4   : > { %v406_v5 = vadd.f32 %v1678_v60, %v384_v63  ;;  %663 = vperm.xlu1 %1455, %v292_v42   ;;  %v922_v63 = vld [vmem:[%s1905_s5] sm:$0xff] }
  0xa5   : > { %v308_v6 = vpop.permute.xlu0 %307 }
  0xa6   : > { %v385_v8 = vmul.f32 %v1670_v57, %v308_v6  ;;  %v506_v9 = vadd.f32 %v490_v3, %v406_v5 }
  0xa7   : > { %v436_v10 = vpop.permute.xlu1 %435 }
  0xa8   : > { %v407_v13 = vadd.f32 %v1678_v60, %v385_v8  ;;  %667 = vperm.xlu1 %1455, %v1611_v37   ;;  %v606_v14 = vadd.f32 %v590_v7, %v506_v9  ;;  %v493_v51 = vmul.f32 %v1673_v58, %v436_v10  ;;  %v925_v8 = vld [vmem:[%s1905_s5 + $0x18] sm:$0xff] }
  0xa9   : > { %v313_v16 = vpop.permute.xlu0 %312 }
  0xaa   : > { %v507_v19 = vadd.f32 %v491_v11, %v407_v13  ;;  %v706_v20 = vadd.f32 %v690_v12, %v606_v14  ;;  %v1389_v12 = vpack.c.bf16 %v925_v8, %v924_v2  ;;  %v926_v13 = vld [vmem:[%s1905_s5 + $0x20] sm:$0xff]  ;;  %v927_v14 = vld [vmem:[%s1905_s5 + $0x28] sm:$0xff] }
  0xac   : > { %1456 = vset.pattern.permute.xlu1 %v1475_v23  ;;  %v323_v21 = vpop.permute.xlu1 %322  ;;  %v722_v22 = vmax.f32 %v706_v20, 0.0  ;;  %v607_v24 = vadd.f32 %v591_v18, %v507_v19 }
  0xad   : > { %v318_v25 = vpop.permute.xlu0 %317  ;;  %372 = vperm.xlu1 %1456, %v1640_v41  }
  0xae   : > { %1273 = vmatprep.mubr.f32.mxu0 %v722_v22  ;;  %v707_v27 = vadd.f32 %v691_v17, %v607_v24  ;;  %v1393_v24 = vpack.c.bf16 %v927_v14, %v926_v13 }
  0xb0   : > { %v723_v28 = vmax.f32 %v707_v27, 0.0 }
  0xb1   : > { %377 = vperm.xlu1 %1456, %v297_v26   ;;  %v532_v29 = vpop.permute.xlu1 %531  ;;  %v328_v30 = vpop.permute.xlu0 %327 }
  0xb2   : > { %1274 = vmatmul.mubr.f32.vlgmr.msra.gmra.mrb[0].mxu0 %v723_v28  ;;  %v389_v45 = vmul.f32 %v1670_v57, %v328_v30  ;;  %v592_v56 = vmul.f32 %v1680_v62, %v532_v29  ;;  %v928_v28 = vld [vmem:[%s1905_s5 + $0x30] sm:$0xff]  ;;  %v929_v29 = vld [vmem:[%s1905_s5 + $0x38] sm:$0xff] }
  0xb4   : > { %v411_v3 = vadd.f32 %v1678_v60, %v389_v45 }
  0xb5   : > { %1458 = vset.pattern.permute.xlu1 %v1474_v15  ;;  %v536_v31 = vpop.permute.xlu1 %535  ;;  %v1700_v32 = vpop.permute.xlu0 %332 }
  0xb6   : > { %575 = vperm.xlu1 %1458, %v1633_v39   ;;  %v593_v52 = vmul.f32 %v1680_v62, %v536_v31 }
  0xb9   : > { %v1703_v23 = vpop.permute.xlu0 %357 }
  0xba   : > { %1459 = vset.pattern.permute.xlu1 %v1472_v0  ;;  %v440_v33 = vpop.permute.xlu1 %439 }
  0xbb   : > { %671 = vperm.xlu1 %1459, %v1616_v38   ;;  %v387_v38 = vmul.f32 %v1670_v57, %v318_v25  ;;  %v494_v48 = vmul.f32 %v1673_v58, %v440_v33 }
  0xbd   : > { %v1707_v34 = vpop.permute.xlu0 %362 }
  0xbe   : > { %v444_v35 = vpop.permute.xlu1 %443 }
  0xbf   : > { %1460 = vset.pattern.permute.xlu1 %v1473_v1  ;;  %v386_v1 = vmul.f32 %v1670_v57, %v313_v16  ;;  %v495_v10 = vmul.f32 %v1673_v58, %v444_v35 }
  0xc0   : > { %483 = vperm.xlu1 %1460, %v297_v26  }
  0xc1   : > { %v408_v46 = vadd.f32 %v1678_v60, %v386_v1  ;;  %v511_v25 = vadd.f32 %v495_v10, %v411_v3  ;;  %v930_v1 = vld [vmem:[%s1905_s5 + $0x40] sm:$0xff] }
  0xc2   : > { %v544_v36 = vpop.permute.xlu0 %543 }
  0xc3   : > { %v636_v37 = vpop.permute.xlu1 %635  ;;  %v595_v18 = vmul.f32 %v1680_v62, %v544_v36 }
  0xc4   : > { %1462 = vset.pattern.permute.xlu1 %v1474_v15  ;;  %v388_v15 = vmul.f32 %v1670_v57, %v323_v21  ;;  %v693_v6 = vmul.f32 %v1685_v4, %v636_v37  ;;  %v1397_v37 = vpack.c.bf16 %v929_v29, %v928_v28 }
  0xc5   : > { %579 = vperm.xlu1 %1462, %v1640_v41   ;;  %v409_v41 = vadd.f32 %v1678_v60, %v387_v38  ;;  %v611_v31 = vadd.f32 %v595_v18, %v511_v25 }
  0xc6   : > { %v1712_v39 = vpop.permute.xlu0 %547  ;;  %v410_v55 = vadd.f32 %v1678_v60, %v388_v15  ;;  %v931_v15 = vld [vmem:[%s1905_s5 + $0x48] sm:$0xff] }
  0xc7   : > { %v509_v5 = vadd.f32 %v493_v51, %v409_v41  ;;  %v390_v51 = vmul.f32 %v1670_v57, %v1700_v32 }
  0xc8   : > { %v540_v40 = vpop.permute.xlu1 %539  ;;  %v510_v9 = vadd.f32 %v494_v48, %v410_v55  ;;  %v932_v48 = vld [vmem:[%s1905_s5 + $0x50] sm:$0xff] }
  0xc9   : > { %583 = vperm.xlu1 %1462, %v297_v26   ;;  %v594_v59 = vmul.f32 %v1680_v62, %v540_v40  ;;  %v609_v16 = vadd.f32 %v593_v52, %v509_v5  ;;  %v412_v32 = vadd.f32 %v1678_v60, %v390_v51 }
  0xca   : > { %v1714_v42 = vpop.permute.xlu0 %567 }
  0xcb   : > { %v610_v19 = vadd.f32 %v594_v59, %v510_v9  ;;  %v709_v22 = vadd.f32 %v693_v6, %v609_v16  ;;  %v697_v9 = vmul.f32 %v1685_v4, %v1660_v49 }
  0xcd   : > { %1463 = vset.pattern.permute.xlu1 %v1472_v0  ;;  %v1718_v43 = vpop.permute.xlu1 %337  ;;  %v692_v0 = vmul.f32 %v1685_v4, %v1658_v47  ;;  %v923_v47 = vld [vmem:[%s1905_s5 + $0x8] sm:$0xff]  ;;  %v725_v36 = vmax.f32 %v709_v22, 0.0 }
  0xce   : > { %683 = vperm.xlu1 %1463, %v297_v26   ;;  %v1721_v44 = vpop.permute.xlu0 %571  ;;  %v1385_v7 = vpack.c.bf16 %v923_v47, %v922_v63  ;;  %v935_v63 = vld [vmem:[%s1905_s5 + $0x68] sm:$0xff] }
  0xd0   : > { %1386 = vmatprep.subr.bf16.mxu1 %v1385_v7 }
  0xd1   : > { %1388 = vmatpush3.bf16.msra.mxu1 %v1385_v7  ;;  %v596_v7 = vmul.f32 %v1680_v62, %v1712_v39 }
  0xd2   : > { %v1728_v50 = vpop.permute.xlu1 %447  ;;  %1390 = vmatprep.subr.bf16.mxu1 %v1389_v12 }
  0xd3   : > { %v432_v54 = vpop.permute.xlu0 %431  ;;  %v496_v47 = vmul.f32 %v1673_v58, %v1728_v50 }
  0xd4   : > { %v492_v61 = vmul.f32 %v1673_v58, %v432_v54  ;;  %v391_v54 = vmul.f32 %v1670_v57, %v1718_v43 }
  0xd5   : > { %1392 = vmatpush3.bf16.msra.mxu1 %v1389_v12  ;;  %v512_v8 = vadd.f32 %v496_v47, %v412_v32 }
  0xd6   : > { %v508_v11 = vadd.f32 %v492_v61, %v408_v46  ;;  %1394 = vmatprep.subr.bf16.mxu1 %v1393_v24  ;;  %v1401_v46 = vpack.c.bf16 %v931_v15, %v930_v1  ;;  %v934_v61 = vld [vmem:[%s1905_s5 + $0x60] sm:$0xff]  ;;  %v413_v43 = vadd.f32 %v1678_v60, %v391_v54  ;;  %v601_v15 = vmul.f32 %v1680_v62, %v1714_v42 }
  0xd7   : > { %v640_v17 = vpop.permute.xlu1 %639  ;;  %v452_v52 = vpop.permute.xlu0 %451  ;;  %v1409_v3 = vpack.c.bf16 %v935_v63, %v934_v61  ;;  %v396_v42 = vmul.f32 %v1670_v57, %v1707_v34 }
  0xd8   : > { %v608_v20 = vadd.f32 %v592_v56, %v508_v11  ;;  %v694_v21 = vmul.f32 %v1685_v4, %v640_v17  ;;  %v497_v59 = vmul.f32 %v1673_v58, %v452_v52  ;;  %v612_v11 = vadd.f32 %v596_v7, %v512_v8 }
  0xd9   : > { %1396 = vmatpush3.bf16.msra.mxu1 %v1393_v24 }
  0xda   : > { %v710_v26 = vadd.f32 %v694_v21, %v610_v19  ;;  %v708_v27 = vadd.f32 %v692_v0, %v608_v20  ;;  %1398 = vmatprep.subr.bf16.mxu1 %v1397_v37  ;;  %v933_v0 = vld [vmem:[%s1905_s5 + $0x58] sm:$0xff]  ;;  %v513_v5 = vadd.f32 %v497_v59, %v413_v43  ;;  %v418_v43 = vadd.f32 %v1678_v60, %v396_v42 }
  0xdb   : > { %v644_v30 = vpop.permute.xlu1 %643  ;;  %v1405_v56 = vpack.c.bf16 %v933_v0, %v932_v48  ;;  %v456_v19 = vpop.permute.xlu0 %455 }
  0xdc   : > { %v695_v33 = vmul.f32 %v1685_v4, %v644_v30  ;;  %v724_v35 = vmax.f32 %v708_v27, 0.0  ;;  %v726_v40 = vmax.f32 %v710_v26, 0.0  ;;  %v498_v21 = vmul.f32 %v1673_v58, %v456_v19 }
  0xdd   : > { %1400 = vmatpush3.bf16.msra.mxu1 %v1397_v37  ;;  %v698_v26 = vmul.f32 %v1685_v4, %v1664_v53  ;;  %v395_v37 = vmul.f32 %v1670_v57, %v1703_v23 }
  0xde   : > { %v711_v38 = vadd.f32 %v695_v33, %v611_v31  ;;  %1276 = vmatprep.mubr.f32.mxu0 %v724_v35  ;;  %1402 = vmatprep.subr.bf16.mxu1 %v1401_v46  ;;  %v936_v31 = vld [vmem:[%s1905_s5 + $0x70] sm:$0xff]  ;;  %v937_v33 = vld [vmem:[%s1905_s5 + $0x78] sm:$0xff] }
  0xdf   : > { %1277 = vmatmul.mubr.f32.gmra.mrb[2].mxu0 %v725_v36  ;;  %v1413_v36 = vpack.c.bf16 %v937_v33, %v936_v31  ;;  %v417_v1 = vadd.f32 %v1678_v60, %v395_v37 }
  0xe0   : > { %v727_v41 = vmax.f32 %v711_v38, 0.0  ;;  %1279 = vmatprep.mubr.f32.mxu0 %v726_v40  ;;  %v343_v45 = vpop.permute.xlu1 %342 }
  0xe1   : > { %1404 = vmatpush3.bf16.msra.mxu1 %v1401_v46  ;;  %v392_v39 = vmul.f32 %v1670_v57, %v343_v45 }
  0xe2   : > { %1406 = vmatprep.subr.bf16.mxu1 %v1405_v56 }
  0xe3   : > { %1280 = vmatmul.mubr.f32.gmra.mrb[4].mxu0 %v727_v41  ;;  %v414_v49 = vadd.f32 %v1678_v60, %v392_v39 }
  0xe4   : > { %v348_v55 = vpop.permute.xlu1 %347 }
  0xe5   : > { %1408 = vmatpush3.bf16.msra.mxu1 %v1405_v56  ;;  %v514_v24 = vadd.f32 %v498_v21, %v414_v49  ;;  %v393_v53 = vmul.f32 %v1670_v57, %v348_v55 }
  0xe6   : > { %1410 = vmatprep.subr.bf16.mxu1 %v1409_v3 }
  0xe7   : > { %v415_v45 = vadd.f32 %v1678_v60, %v393_v53 }
  0xe9   : > { %v552_v2 = vpop.permute.xlu1 %551  ;;  %1412 = vmatpush3.bf16.msra.mxu1 %v1409_v3 }
  0xea   : > { %v597_v6 = vmul.f32 %v1680_v62, %v552_v2  ;;  %1414 = vmatprep.subr.bf16.mxu1 %v1413_v36  ;;  %v602_v2 = vmul.f32 %v1680_v62, %v1721_v44 }
  0xec   : > { %v613_v10 = vadd.f32 %v597_v6, %v513_v5 }
  0xed   : > { %1416 = vmatpush3.bf16.msra.mxu1 %v1413_v36 }
  0xee   : > { %v648_v50 = vpop.permute.xlu1 %647  ;;  %v713_v13 = vadd.f32 %v697_v9, %v613_v10 }
  0xef   : > { %v696_v12 = vmul.f32 %v1685_v4, %v648_v50 }
  0xf0   : > { %v729_v18 = vmax.f32 %v713_v13, 0.0 }
  0xf1   : > { %v712_v14 = vadd.f32 %v696_v12, %v612_v11 }
  0xf3   : > { %v728_v16 = vmax.f32 %v712_v14, 0.0  ;;  %v460_v17 = vpop.permute.xlu1 %459 }
  0xf4   : > { %v499_v40 = vmul.f32 %v1673_v58, %v460_v17 }
  0xf5   : > { %1282 = vmatprep.mubr.f32.mxu0 %v728_v16 }
  0xf6   : > { %1283 = vmatmul.mubr.f32.gmra.mrb[6].mxu0 %v729_v18  ;;  %v515_v23 = vadd.f32 %v499_v40, %v415_v45  ;;  %v476_v18 = vpop.permute.xlu0 %475 }
  0xf7   : > { %v503_v21 = vmul.f32 %v1673_v58, %v476_v18 }
  0xf8   : > { %v353_v20 = vpop.permute.xlu1 %352 }
  0xf9   : > { %v394_v63 = vmul.f32 %v1670_v57, %v353_v20 }
  0xfa   : > { %v480_v20 = vpop.permute.xlu0 %479 }
  0xfb   : > { %v416_v5 = vadd.f32 %v1678_v60, %v394_v63 }
  0xfd   : > { %v556_v22 = vpop.permute.xlu1 %555 }
  0xfe   : > { %v598_v25 = vmul.f32 %v1680_v62, %v556_v22 }
 0x100   : > { %v614_v27 = vadd.f32 %v598_v25, %v514_v24  ;;  %v676_v24 = vpop.permute.xlu0 %675 }
 0x101   : > { %v560_v28 = vpop.permute.xlu1 %559 }
 0x102   : > { %v714_v29 = vadd.f32 %v698_v26, %v614_v27  ;;  %v599_v46 = vmul.f32 %v1680_v62, %v560_v28  ;;  %v703_v28 = vmul.f32 %v1685_v4, %v676_v24 }
 0x104   : > { %v730_v30 = vmax.f32 %v714_v29, 0.0  ;;  %v615_v52 = vadd.f32 %v599_v46, %v515_v23 }
 0x106   : > { %1285 = vmatprep.mubr.f32.mxu0 %v730_v30  ;;  %v464_v35 = vpop.permute.xlu1 %463 }
 0x107   : > { %v500_v32 = vmul.f32 %v1673_v58, %v464_v35 }
 0x109   : > { %v516_v8 = vadd.f32 %v500_v32, %v416_v5 }
 0x10a   : > { %v468_v38 = vpop.permute.xlu1 %467 }
 0x10b   : > { %v501_v41 = vmul.f32 %v1673_v58, %v468_v38  ;;  %v504_v38 = vmul.f32 %v1673_v58, %v480_v20 }
 0x10d   : > { %v517_v48 = vadd.f32 %v501_v41, %v417_v1  ;;  %v680_v1 = vpop.permute.xlu0 %679 }
 0x10e   : > { %v704_v46 = vmul.f32 %v1685_v4, %v680_v1 }
 0x10f   : > { %v660_v0 = vpop.permute.xlu1 %659  ;;  %v617_v51 = vadd.f32 %v601_v15, %v517_v48 }
 0x110   : > { %v699_v54 = vmul.f32 %v1685_v4, %v660_v0 }
 0x112   : > { %v715_v55 = vadd.f32 %v699_v54, %v615_v52 }
 0x114   : > { %v731_v56 = vmax.f32 %v715_v55, 0.0  ;;  %v564_v59 = vpop.permute.xlu1 %563 }
 0x115   : > { %v600_v6 = vmul.f32 %v1680_v62, %v564_v59 }
 0x116   : > { %1286 = vmatmul.mubr.f32.gmra.mrb[8].mxu0 %v731_v56 }
 0x117   : > { %v616_v10 = vadd.f32 %v600_v6, %v516_v8 }
 0x119   : > { %v368_v61 = vpop.permute.xlu1 %367 }
 0x11a   : > { %v397_v39 = vmul.f32 %v1670_v57, %v368_v61 }
 0x11c   : > { %v419_v49 = vadd.f32 %v1678_v60, %v397_v39 }
 0x11e   : > { %v472_v47 = vpop.permute.xlu1 %471  ;;  %v519_v25 = vadd.f32 %v503_v21, %v419_v49 }
 0x11f   : > { %v502_v3 = vmul.f32 %v1673_v58, %v472_v47 }
 0x121   : > { %v518_v7 = vadd.f32 %v502_v3, %v418_v43 }
 0x123   : > { %v664_v9 = vpop.permute.xlu1 %663  ;;  %v618_v34 = vadd.f32 %v602_v2, %v518_v7 }
 0x124   : > { %v700_v50 = vmul.f32 %v1685_v4, %v664_v9 }
 0x126   : > { %v716_v11 = vadd.f32 %v700_v50, %v616_v10 }
 0x127   : > { %v668_v12 = vpop.permute.xlu1 %667 }
 0x128   : > { %v732_v13 = vmax.f32 %v716_v11, 0.0  ;;  %v701_v14 = vmul.f32 %v1685_v4, %v668_v12 }
 0x12a   : > { %v717_v16 = vadd.f32 %v701_v14, %v617_v51  ;;  %1288 = vmatprep.mubr.f32.mxu0 %v732_v13 }
 0x12c   : > { %v733_v44 = vmax.f32 %v717_v16, 0.0  ;;  %v373_v17 = vpop.permute.xlu1 %372 }
 0x12d   : > { %v398_v33 = vmul.f32 %v1670_v57, %v373_v17 }
 0x12e   : > { %1289 = vmatmul.mubr.f32.gmra.mrb[10].mxu0 %v733_v44 }
 0x12f   : > { %v420_v40 = vadd.f32 %v1678_v60, %v398_v33 }
 0x130   : > { %v378_v19 = vpop.permute.xlu1 %377 }
 0x131   : > { %v520_v41 = vadd.f32 %v504_v38, %v420_v40  ;;  %v399_v48 = vmul.f32 %v1670_v57, %v378_v19  ;;  %v1173_v57 = vld [vmem:[%s1904_s4] ss:$0 sm:$0xff] }
 0x133   : > { %v421_v54 = vadd.f32 %v1678_v60, %v399_v48 }
 0x135   : > { %v576_v22 = vpop.permute.xlu1 %575 }
 0x136   : > { %v603_v26 = vmul.f32 %v1680_v62, %v576_v22 }
 0x138   : > { %v619_v27 = vadd.f32 %v603_v26, %v519_v25 }
 0x13a   : > { %v672_v29 = vpop.permute.xlu1 %671  ;;  %v719_v31 = vadd.f32 %v703_v28, %v619_v27 }
 0x13b   : > { %v702_v30 = vmul.f32 %v1685_v4, %v672_v29 }
 0x13c   : > { %v735_v53 = vmax.f32 %v719_v31, 0.0 }
 0x13d   : > { %v718_v35 = vadd.f32 %v702_v30, %v618_v34 }
 0x13f   : > { %v734_v36 = vmax.f32 %v718_v35, 0.0  ;;  %v484_v37 = vpop.permute.xlu1 %483 }
 0x140   : > { %v505_v0 = vmul.f32 %v1673_v58, %v484_v37 }
 0x141   : > { %1291 = vmatprep.mubr.f32.mxu0 %v734_v36 }
 0x142   : > { %1292 = vmatmul.mubr.f32.gmra.mrb[12].mxu0 %v735_v53  ;;  %v521_v59 = vadd.f32 %v505_v0, %v421_v54 }
 0x144   : > { %v580_v15 = vpop.permute.xlu1 %579 }
 0x145   : > { %v604_v45 = vmul.f32 %v1680_v62, %v580_v15 }
 0x147   : > { %v620_v23 = vadd.f32 %v604_v45, %v520_v41 }
 0x148   : > { %v584_v51 = vpop.permute.xlu1 %583 }
 0x149   : > { %v720_v52 = vadd.f32 %v704_v46, %v620_v23  ;;  %v605_v55 = vmul.f32 %v1680_v62, %v584_v51  ;;  %v1174_v46 = vld [vmem:[%s1906_s6] ss:$0 sm:$0xff] }
 0x14b   : > { %v736_v56 = vmax.f32 %v720_v52, 0.0  ;;  %v621_v42 = vadd.f32 %v605_v55, %v521_v59 }
 0x14d   : > { %1294 = vmatprep.mubr.f32.mxu0 %v736_v56  ;;  %v684_v61 = vpop.permute.xlu1 %683 }
 0x14e   : > { %v705_v63 = vmul.f32 %v1685_v4, %v684_v61 }
 0x150   : > { %v721_v32 = vadd.f32 %v705_v63, %v621_v42 }
 0x152   : > { %v737_v47 = vmax.f32 %v721_v32, 0.0 }
 0x154   : > { %1295 = vmatmul.mubr.f32.gmra.mrb[14].mxu0 %v737_v47 }
 0x185   : > { %v1275_v58 = vpop.f32.mrb[0].mxu0 }
 0x186   : > { %v833_v43 = vadd.f32 %v1275_v58, %v1173_v57  ;;  %v827_v2 = vpop.f32.mrb[1].mxu0 }
 0x187   : > { %v828_v60 = vadd.f32 %v1173_v57, %v827_v2 }
 0x188   : > { %v907_v62 = vmax.f32 %v833_v43, 0.0 }
 0x189   : > { %v906_v3 = vmax.f32 %v828_v60, 0.0 }
 0x18b   : > { %1329 = vmatprep.mubr.f32.mxu1 %v906_v3 }
 0x18c   : > { %1330 = vmatmul.mubr.f32.vlgmr.msra.gmra.mrb[0].mxu1 %v907_v62 }
 0x1b2   : > { %v1278_v5 = vpop.f32.mrb[2].mxu0 }
 0x1b3   : > { %v843_v6 = vadd.f32 %v1278_v5, %v1173_v57  ;;  %v837_v7 = vpop.f32.mrb[3].mxu0 }
 0x1b4   : > { %v838_v8 = vadd.f32 %v1173_v57, %v837_v7 }
 0x1b5   : > { %v909_v34 = vmax.f32 %v843_v6, 0.0 }
 0x1b6   : > { %v908_v4 = vmax.f32 %v838_v8, 0.0  ;;  %v1281_v9 = vpop.f32.mrb[4].mxu0 }
 0x1b7   : > { %v853_v10 = vadd.f32 %v1281_v9, %v1173_v57  ;;  %v847_v50 = vpop.f32.mrb[5].mxu0 }
 0x1b8   : > { %v848_v11 = vadd.f32 %v1173_v57, %v847_v50  ;;  %1332 = vmatprep.mubr.f32.mxu1 %v908_v4 }
 0x1b9   : > { %1333 = vmatmul.mubr.f32.gmra.mrb[2].mxu1 %v909_v34  ;;  %v911_v13 = vmax.f32 %v853_v10, 0.0 }
 0x1ba   : > { %v910_v12 = vmax.f32 %v848_v11, 0.0 }
 0x1bc   : > { %1335 = vmatprep.mubr.f32.mxu1 %v910_v12 }
 0x1bd   : > { %1336 = vmatmul.mubr.f32.gmra.mrb[4].mxu1 %v911_v13 }
 0x1c9   : > { %v1284_v14 = vpop.f32.mrb[6].mxu0 }
 0x1ca   : > { %v863_v16 = vadd.f32 %v1284_v14, %v1173_v57  ;;  %v857_v44 = vpop.f32.mrb[7].mxu0 }
 0x1cb   : > { %v858_v17 = vadd.f32 %v1173_v57, %v857_v44 }
 0x1cc   : > { %v913_v39 = vmax.f32 %v863_v16, 0.0 }
 0x1cd   : > { %v912_v18 = vmax.f32 %v858_v17, 0.0 }
 0x1cf   : > { %1338 = vmatprep.mubr.f32.mxu1 %v912_v18 }
 0x1d0   : > { %1339 = vmatmul.mubr.f32.gmra.mrb[6].mxu1 %v913_v39 }
 0x1e9   : > { %v1287_v19 = vpop.f32.mrb[8].mxu0 }
 0x1ea   : > { %v873_v20 = vadd.f32 %v1287_v19, %v1173_v57  ;;  %v867_v49 = vpop.f32.mrb[9].mxu0 }
 0x1eb   : > { %v868_v21 = vadd.f32 %v1173_v57, %v867_v49 }
 0x1ec   : > { %v915_v24 = vmax.f32 %v873_v20, 0.0 }
 0x1ed   : > { %v914_v22 = vmax.f32 %v868_v21, 0.0 }
 0x1ef   : > { %1341 = vmatprep.mubr.f32.mxu1 %v914_v22 }
 0x1f0   : > { %1342 = vmatmul.mubr.f32.gmra.mrb[8].mxu1 %v915_v24 }
 0x201   : > { %v1290_v25 = vpop.f32.mrb[10].mxu0 }
 0x202   : > { %v883_v26 = vadd.f32 %v1290_v25, %v1173_v57  ;;  %v877_v27 = vpop.f32.mrb[11].mxu0 }
 0x203   : > { %v878_v28 = vadd.f32 %v1173_v57, %v877_v27 }
 0x204   : > { %v917_v30 = vmax.f32 %v883_v26, 0.0 }
 0x205   : > { %v916_v29 = vmax.f32 %v878_v28, 0.0 }
 0x207   : > { %1344 = vmatprep.mubr.f32.mxu1 %v916_v29 }
 0x208   : > { %1345 = vmatmul.mubr.f32.gmra.mrb[10].mxu1 %v917_v30 }
 0x215   : > { %v1293_v31 = vpop.f32.mrb[12].mxu0 }
 0x216   : > { %v893_v33 = vadd.f32 %v1293_v31, %v1173_v57  ;;  %v887_v35 = vpop.f32.mrb[13].mxu0 }
 0x217   : > { %v888_v36 = vadd.f32 %v1173_v57, %v887_v35 }
 0x218   : > { %v919_v53 = vmax.f32 %v893_v33, 0.0 }
 0x219   : > { %v918_v37 = vmax.f32 %v888_v36, 0.0 }
 0x21b   : > { %1347 = vmatprep.mubr.f32.mxu1 %v918_v37 }
 0x21c   : > { %1348 = vmatmul.mubr.f32.gmra.mrb[12].mxu1 %v919_v53 }
 0x227   : > { %v1296_v40 = vpop.f32.mrb[14].mxu0 }
 0x228   : > { %v903_v38 = vadd.f32 %v1296_v40, %v1173_v57  ;;  %v897_v1 = vpop.f32.mrb[15].mxu0 }
 0x229   : > { %v898_v15 = vadd.f32 %v1173_v57, %v897_v1 }
 0x22a   : > { %v921_v45 = vmax.f32 %v903_v38, 0.0 }
 0x22b   : > { %v920_v41 = vmax.f32 %v898_v15, 0.0 }
 0x22d   : > { %1350 = vmatprep.mubr.f32.mxu1 %v920_v41 }
 0x22e   : > { %1351 = vmatmul.mubr.f32.gmra.mrb[14].mxu1 %v921_v45 }
 0x25f   : > { %v1331_v48 = vpop.f32.mrb[0].mxu1 }
 0x260   : > { %v1017_v23 = vadd.f32 %v1331_v48, %v1174_v46  ;;  %v1011_v0 = vpop.f32.mrb[1].mxu1 }
 0x261   : > { %v1012_v51 = vadd.f32 %v1174_v46, %v1011_v0 }
 0x262   : > { %1092 = vst.msk [vmem:[%s1863_s23 + $0x8] sm:$0xff] %vm1090_vm0, %v1017_v23 }
 0x263   : > { %1091 = vst.msk [vmem:[%s1863_s23] sm:$0xff] %vm1090_vm0, %v1012_v51 }
 0x28c   : > { %v1334_v52 = vpop.f32.mrb[2].mxu1 }
 0x28d   : > { %v1027_v54 = vadd.f32 %v1334_v52, %v1174_v46  ;;  %v1021_v55 = vpop.f32.mrb[3].mxu1 }
 0x28e   : > { %v1022_v56 = vadd.f32 %v1174_v46, %v1021_v55 }
 0x28f   : > { %1094 = vst.msk [vmem:[%s1863_s23 + $0x18] sm:$0xff] %vm1090_vm0, %v1027_v54 }
 0x290   : > { %1093 = vst.msk [vmem:[%s1863_s23 + $0x10] sm:$0xff] %vm1090_vm0, %v1022_v56  ;;  %v1337_v59 = vpop.f32.mrb[4].mxu1 }
 0x291   : > { %v1037_v61 = vadd.f32 %v1337_v59, %v1174_v46  ;;  %v1031_v42 = vpop.f32.mrb[5].mxu1 }
 0x292   : > { %v1032_v63 = vadd.f32 %v1174_v46, %v1031_v42 }
 0x293   : > { %1096 = vst.msk [vmem:[%s1863_s23 + $0x28] sm:$0xff] %vm1090_vm0, %v1037_v61 }
 0x294   : > { %1095 = vst.msk [vmem:[%s1863_s23 + $0x20] sm:$0xff] %vm1090_vm0, %v1032_v63 }
 0x2a3   : > { %v1340_v32 = vpop.f32.mrb[6].mxu1 }
 0x2a4   : > { %v1047_v47 = vadd.f32 %v1340_v32, %v1174_v46  ;;  %v1041_v57 = vpop.f32.mrb[7].mxu1 }
 0x2a5   : > { %v1042_v58 = vadd.f32 %v1174_v46, %v1041_v57 }
 0x2a6   : > { %1098 = vst.msk [vmem:[%s1863_s23 + $0x38] sm:$0xff] %vm1090_vm0, %v1047_v47 }
 0x2a7   : > { %1097 = vst.msk [vmem:[%s1863_s23 + $0x30] sm:$0xff] %vm1090_vm0, %v1042_v58 }
 0x2c3   : > { %v1343_v43 = vpop.f32.mrb[8].mxu1 }
 0x2c4   : > { %v1057_v2 = vadd.f32 %v1343_v43, %v1174_v46  ;;  %v1051_v60 = vpop.f32.mrb[9].mxu1 }
 0x2c5   : > { %v1052_v3 = vadd.f32 %v1174_v46, %v1051_v60 }
 0x2c6   : > { %1100 = vst.msk [vmem:[%s1863_s23 + $0x48] sm:$0xff] %vm1090_vm0, %v1057_v2 }
 0x2c7   : > { %1099 = vst.msk [vmem:[%s1863_s23 + $0x40] sm:$0xff] %vm1090_vm0, %v1052_v3 }
 0x2db   : > { %v1346_v62 = vpop.f32.mrb[10].mxu1 }
 0x2dc   : > { %v1067_v5 = vadd.f32 %v1346_v62, %v1174_v46  ;;  %v1061_v6 = vpop.f32.mrb[11].mxu1 }
 0x2dd   : > { %v1062_v7 = vadd.f32 %v1174_v46, %v1061_v6 }
 0x2de   : > { %1102 = vst.msk [vmem:[%s1863_s23 + $0x58] sm:$0xff] %vm1090_vm0, %v1067_v5 }
 0x2df   : > { %1101 = vst.msk [vmem:[%s1863_s23 + $0x50] sm:$0xff] %vm1090_vm0, %v1062_v7 }
 0x2ef   : > { %v1349_v8 = vpop.f32.mrb[12].mxu1 }
 0x2f0   : > { %v1077_v4 = vadd.f32 %v1349_v8, %v1174_v46  ;;  %v1071_v9 = vpop.f32.mrb[13].mxu1 }
 0x2f1   : > { %v1072_v34 = vadd.f32 %v1174_v46, %v1071_v9 }
 0x2f2   : > { %1104 = vst.msk [vmem:[%s1863_s23 + $0x68] sm:$0xff] %vm1090_vm0, %v1077_v4 }
 0x2f3   : > { %1103 = vst.msk [vmem:[%s1863_s23 + $0x60] sm:$0xff] %vm1090_vm0, %v1072_v34 }
 0x301   : > { %v1352_v10 = vpop.f32.mrb[14].mxu1 }
 0x302   : > { %v1087_v50 = vadd.f32 %v1352_v10, %v1174_v46  ;;  %v1081_v11 = vpop.f32.mrb[15].mxu1 }
 0x303   : > { %v1082_v12 = vadd.f32 %v1174_v46, %v1081_v11 }
 0x304   : > { %1106 = vst.msk [vmem:[%s1863_s23 + $0x78] sm:$0xff] %vm1090_vm0, %v1087_v50 }
 0x305   : > { %1105 = vst.msk [vmem:[%s1863_s23 + $0x70] sm:$0xff] %vm1090_vm0, %v1082_v12 }
 0x306 PF: > { %s17_s24 = sadd.s32 1, %s1470_s24  }
 0x307   : > { %p14_p4 = scmp.ge.s32.totalorder %s17_s24, 4  }
 0x309   :  { %16 = sbr.rel (!%p14_p4) target bundleno = 1 (0x1), region = 78 }

</bundles_post_ra>
